<compile_context>
chip_gen: v7x
topology: tpu7x:2x2x1
jax: 0.10.0
libtpu: 0.0.40
codegen_flags: <defaults>
</compile_context>

<pallas_src>
import functools

import jax
import jax.numpy as jnp
import numpy as np
from jax.experimental import pallas as pl
from jax.experimental.pallas import tpu as pltpu


def _round_up(x, m):
    return ((x + m - 1) // m) * m


def _make_neumf_kernel(n_mlp_layers: int, apply_sigmoid: bool, compute_dtype):
    """Kernel body for a fixed number of MLP (Linear+ReLU) layers."""

    def kernel(*refs):
        # ref order: xu, xi,
        #            w0_user_ext, w0_item_ext, b0,
        #            (w_i, b_i) for remaining MLP layers,
        #            head_mf_mask, w_final_mlp, b_final, out
        xu_ref, xi_ref = refs[0], refs[1]
        w0u_ref, w0i_ref, b0_ref = refs[2], refs[3], refs[4]
        idx = 5

        xu = xu_ref[...]          # (TB, F)  F = mf_dim + mlp0//2
        xi = xi_ref[...]          # (TB, F)

        # --- MLP branch.  Layer 0: zero-padded split weights so the full
        # concatenated [mf | mlp] streams can be fed straight to the MXU.
        h = (jnp.dot(xu, w0u_ref[...], preferred_element_type=jnp.float32)
             + jnp.dot(xi, w0i_ref[...], preferred_element_type=jnp.float32)
             + b0_ref[...])
        # bias add + ReLU in f32 (VPU), cast to compute dtype right after.
        h = jnp.maximum(h, 0.0).astype(compute_dtype)

        for _ in range(n_mlp_layers - 1):
            w = refs[idx][...]      # [in, out] compute dtype
            b = refs[idx + 1][...]  # [1, out] f32
            idx += 2
            h = jnp.dot(h, w, preferred_element_type=jnp.float32) + b
            h = jnp.maximum(h, 0.0).astype(compute_dtype)

        # --- MF branch: elementwise product in f32 on the VPU.  The final
        # layer's MF weights are folded into the user table, so the head's MF
        # "weight" is just a 0/1 column mask selecting the mf columns.
        mf_mask = refs[idx][...]     # (1, F) f32
        w_mlp = refs[idx + 1][...]   # (1, mlp_last) compute dtype
        b_f = refs[idx + 2][...]     # (1, 1) f32
        out_ref = refs[idx + 3]      # block (1, 1, TB)

        prod = xu.astype(jnp.float32) * xi.astype(jnp.float32)   # (TB, F)

        # Head: (1,K) x (TB,K)^T contractions -> lane-dense (1, TB) result.
        dn = (((1,), (1,)), ((), ()))
        y = (jax.lax.dot_general(mf_mask, prod, dn,
                                 preferred_element_type=jnp.float32)
             + jax.lax.dot_general(w_mlp, h, dn,
                                   preferred_element_type=jnp.float32)
             + b_f)
        if apply_sigmoid:
            # exp on the EUP; approx reciprocal also on the EUP (off the VALU).
            y = pl.reciprocal(1.0 + jnp.exp(-y), approx=True)
        out_ref[...] = y.reshape(out_ref.shape).astype(out_ref.dtype)

    return kernel


def prepare_params(params, compute_dtype=jnp.bfloat16):
    """Cast/concat/fold parameters for the Pallas kernel.

    bf16 halves HBM/VMEM traffic of the embedding streams (the dominant cost);
    accumulation stays f32 inside the kernel.  Pass jnp.float32 for an
    exact-precision path.
    """
    mf_dim = params["mf_user_embed"].shape[1]
    half = params["mlp_user_embed"].shape[1]

    fw = params["final_w"]                     # [mf_dim + mlp_last, 1] f32
    w_mf = fw[:mf_dim, 0]                      # (mf_dim,)

    # Fold the MF half of the final layer into the user table (f32, pre-cast),
    # then pre-concatenate user-side and item-side tables -> 2 gathers.
    mf_user_scaled = params["mf_user_embed"] * w_mf[None, :]
    user_table = jnp.concatenate([mf_user_scaled, params["mlp_user_embed"]], axis=1)
    item_table = jnp.concatenate([params["mf_item_embed"],
                                  params["mlp_item_embed"]], axis=1)

    cp = {
        "user_table": user_table.astype(compute_dtype),   # (nb_users, F)
        "item_table": item_table.astype(compute_dtype),   # (nb_items, F)
    }

    # Layer-0 weight split per stream and zero-padded over the mf columns so
    # the kernel feeds the full (TB, F) streams directly (no slicing).
    w0 = params["mlp_w"][0]                    # [mlp0, mlp1], mlp0 = 2*half
    zeros_mf = jnp.zeros((mf_dim, w0.shape[1]), w0.dtype)
    cp["mlp_w0_user"] = jnp.concatenate([zeros_mf, w0[:half]], axis=0).astype(compute_dtype)
    cp["mlp_w0_item"] = jnp.concatenate([zeros_mf, w0[half:]], axis=0).astype(compute_dtype)
    cp["mlp_b0"] = params["mlp_b"][0].astype(jnp.float32)
    cp["mlp_w_rest"] = tuple(w.astype(compute_dtype) for w in params["mlp_w"][1:])
    cp["mlp_b_rest"] = tuple(b.astype(jnp.float32) for b in params["mlp_b"][1:])

    # Head: MF part is a 0/1 mask (weights folded above, kept f32);
    # MLP part is the transposed MLP half of the final layer.
    cp["head_mf_mask"] = jnp.concatenate(
        [jnp.ones((1, mf_dim), jnp.float32), jnp.zeros((1, half), jnp.float32)],
        axis=1)                                              # (1, F) f32
    cp["final_w_mlp"] = fw[mf_dim:].T.astype(compute_dtype)  # (1, mlp_last)
    cp["final_b"] = params["final_b"].astype(jnp.float32)    # (1, 1)
    return cp


@functools.partial(jax.jit, static_argnames=("sigmoid", "block_b"))
def neumf_forward(cparams, user, item, sigmoid=False, block_b=2048):
    """NeuMF forward.  Embedding gathers in JAX; dense compute in Pallas."""
    batch = user.shape[0]
    feat = cparams["user_table"].shape[1]

    # --- Batch tiling: lane-dense (multiple of 128), megacore-aware (>= 2
    # tiles whenever the padded batch allows so both v7x TCs get work),
    # capped by block_b (sweep 2048/4096/8192 per generation).
    b128 = _round_up(max(batch, 1), 128)
    tb = min(block_b, b128)
    if b128 >= 256:
        tb = min(tb, max(128, (b128 // 2) // 128 * 128))
    tb = max(128, (tb // 128) * 128)
    b_pad = _round_up(batch, tb)
    n_tiles = b_pad // tb
    pad = b_pad - batch

    user_p = jnp.pad(user, (0, pad))
    item_p = jnp.pad(item, (0, pad))

    # Embedding lookups (glue): two gathers on the pre-concatenated tables.
    # TODO(synk): fuse these gathers into the kernel (scalar-prefetch the
    # indices, tables via memory_space=pl.ANY, per-tile double-buffered
    # pltpu.make_async_copy row gathers) to remove this HBM round trip.
    xu = cparams["user_table"][user_p]    # (B_pad, F)
    xi = cparams["item_table"][item_p]    # (B_pad, F)

    n_mlp_layers = 1 + len(cparams["mlp_w_rest"])
    compute_dtype = cparams["user_table"].dtype

    inputs = [xu, xi,
              cparams["mlp_w0_user"], cparams["mlp_w0_item"], cparams["mlp_b0"]]
    for w, b in zip(cparams["mlp_w_rest"], cparams["mlp_b_rest"]):
        inputs += [w, b]
    inputs += [cparams["head_mf_mask"], cparams["final_w_mlp"], cparams["final_b"]]

    # Activations: batch-tiled, double-buffered by the pipeline.
    in_specs = [pl.BlockSpec((tb, feat), lambda i: (i, 0)),
                pl.BlockSpec((tb, feat), lambda i: (i, 0))]
    # Weights/biases: VMEM-resident (constant index map), single-buffered.
    in_specs += [pl.BlockSpec(a.shape, lambda i: (0, 0),
                              pipeline_mode=pl.Buffered(buffer_count=1))
                 for a in inputs[2:]]

    # Lane-dense output: one (1, TB) row per grid step, batch on the lane axis.
    out_shape = jax.ShapeDtypeStruct((n_tiles, 1, tb), jnp.float32)
    out_specs = pl.BlockSpec((1, 1, tb), lambda i: (i, 0, 0))

    # --- VMEM budget -> explicit scoped-VMEM limit (v5e default is 16 MiB;
    # keep the cap comfortably under v7x's 64 MiB physical VMEM).
    act_item = xu.dtype.itemsize
    w_bytes = sum(int(np.prod(a.shape)) * a.dtype.itemsize for a in inputs[2:])
    widths = [cparams["mlp_w0_user"].shape[1]] + \
             [w.shape[1] for w in cparams["mlp_w_rest"]]
    max_w = max(widths + [feat])
    vmem_est = (2 * 2 * tb * feat * act_item   # double-buffered activation streams
                + w_bytes                      # single-buffered resident weights
                + 2 * tb * 4                   # double-buffered (1,1,TB) f32 output
                + 4 * tb * max_w * 4)          # f32 h / temporaries headroom
    vmem_limit = int(min(max(vmem_est + (8 << 20), 24 << 20), 56 << 20))

    # Advisory cost hint for the XLA scheduler.
    mlp1 = cparams["mlp_w0_user"].shape[1]
    layer_flops = 2 * (2 * feat * mlp1)
    for w in cparams["mlp_w_rest"]:
        layer_flops += 2 * w.shape[0] * w.shape[1]
    head_flops = 2 * (feat + cparams["final_w_mlp"].shape[1])
    flops = b_pad * (layer_flops + head_flops + feat)
    bytes_accessed = 2 * b_pad * feat * act_item + w_bytes + b_pad * 4
    transcendentals = 2 * b_pad if sigmoid else 0

    out = pl.pallas_call(
        _make_neumf_kernel(n_mlp_layers, sigmoid, compute_dtype),
        out_shape=out_shape,
        grid=(n_tiles,),
        in_specs=in_specs,
        out_specs=out_specs,
        compiler_params=pltpu.CompilerParams(
            dimension_semantics=("parallel",),
            vmem_limit_bytes=vmem_limit),
        cost_estimate=pl.CostEstimate(flops=int(flops),
                                      transcendentals=int(transcendentals),
                                      bytes_accessed=int(bytes_accessed)),
    )(*inputs)

    return out.reshape(b_pad, 1)[:batch]


def init_neumf_params(key, nb_users, nb_items, mf_dim, mlp_layer_sizes):
    """Deterministic parameter init matching the PyTorch module's __init__."""
    assert mlp_layer_sizes[0] % 2 == 0
    assert len(mlp_layer_sizes) >= 2
    keys = jax.random.split(key, 4 + 2 * len(mlp_layer_sizes) + 2)
    ki = iter(range(len(keys)))

    params = {}
    params["mf_user_embed"] = 0.01 * jax.random.normal(
        keys[next(ki)], (nb_users, mf_dim), dtype=jnp.float32)
    params["mf_item_embed"] = 0.01 * jax.random.normal(
        keys[next(ki)], (nb_items, mf_dim), dtype=jnp.float32)
    params["mlp_user_embed"] = 0.01 * jax.random.normal(
        keys[next(ki)], (nb_users, mlp_layer_sizes[0] // 2), dtype=jnp.float32)
    params["mlp_item_embed"] = 0.01 * jax.random.normal(
        keys[next(ki)], (nb_items, mlp_layer_sizes[0] // 2), dtype=jnp.float32)

    mlp_w, mlp_b = [], []
    for i in range(1, len(mlp_layer_sizes)):
        fan_in, fan_out = mlp_layer_sizes[i - 1], mlp_layer_sizes[i]
        limit = float(np.sqrt(6.0 / (fan_in + fan_out)))  # glorot uniform
        w = jax.random.uniform(keys[next(ki)], (fan_in, fan_out),
                               minval=-limit, maxval=limit, dtype=jnp.float32)
        blim = float(1.0 / np.sqrt(fan_in))  # PyTorch default Linear bias init
        b = jax.random.uniform(keys[next(ki)], (1, fan_out),
                               minval=-blim, maxval=blim, dtype=jnp.float32)
        mlp_w.append(w)
        mlp_b.append(b)
    params["mlp_w"] = mlp_w
    params["mlp_b"] = mlp_b

    fan_in = mlp_layer_sizes[-1] + mf_dim
    limit = float(np.sqrt(3.0 / fan_in))  # lecun uniform
    params["final_w"] = jax.random.uniform(keys[next(ki)], (fan_in, 1),
                                           minval=-limit, maxval=limit,
                                           dtype=jnp.float32)
    blim = float(1.0 / np.sqrt(fan_in))
    params["final_b"] = jax.random.uniform(keys[next(ki)], (1, 1),
                                           minval=-blim, maxval=blim,
                                           dtype=jnp.float32)
    return params


def neumf_reference(params, user, item, sigmoid=False):
    """Pure-JAX f32 reference (mirrors the PyTorch forward exactly)."""
    xmf = params["mf_user_embed"][user] * params["mf_item_embed"][item]
    xmlp = jnp.concatenate(
        [params["mlp_user_embed"][user], params["mlp_item_embed"][item]], axis=1)
    for w, b in zip(params["mlp_w"], params["mlp_b"]):
        xmlp = jnp.maximum(xmlp @ w + b, 0.0)
    x = jnp.concatenate([xmf, xmlp], axis=1)
    y = x @ params["final_w"] + params["final_b"]
    if sigmoid:
        y = jax.nn.sigmoid(y)
    return y


if __name__ == "__main__":
    nb_users, nb_items = 32, 64
    mf_dim = 16
    mlp_layer_sizes = [32, 64, 32, 16]
    batch = 8

    key = jax.random.PRNGKey(0)
    pkey, ukey, ikey = jax.random.split(key, 3)
    params = init_neumf_params(pkey, nb_users, nb_items, mf_dim, mlp_layer_sizes)

    user = jax.random.randint(ukey, (batch,), 0, nb_users, dtype=jnp.int32)
    item = jax.random.randint(ikey, (batch,), 0, nb_items, dtype=jnp.int32)

    # Exact-precision (f32) path: tight check against the pure-JAX reference.
    cparams_f32 = prepare_params(params, jnp.float32)
    out_f32 = jax.block_until_ready(
        neumf_forward(cparams_f32, user, item, sigmoid=False))
    ref = neumf_reference(params, user, item, sigmoid=False)
    np.testing.assert_allclose(np.asarray(out_f32), np.asarray(ref),
                               rtol=1e-3, atol=1e-3)
    assert out_f32.shape == (batch, 1)

    # Production bf16 path (with sigmoid): looser tolerance for bf16 streams.
    cparams_bf16 = prepare_params(params, jnp.bfloat16)
    out_bf16 = jax.block_until_ready(
        neumf_forward(cparams_bf16, user, item, sigmoid=True))
    ref_sig = neumf_reference(params, user, item, sigmoid=True)
    np.testing.assert_allclose(np.asarray(out_bf16), np.asarray(ref_sig),
                               rtol=5e-2, atol=5e-2)
    assert out_bf16.shape == (batch, 1)

    print("KERNEL_OK")
</pallas_src>

<mosaic_0001>
module attributes {stable_mosaic.version = 11 : i64} {
  func.func @kernel(%arg0: i32, %arg1: memref<128x32xf32, #tpu.memory_space<vmem>>, %arg2: memref<128x32xf32, #tpu.memory_space<vmem>>, %arg3: memref<32x64xf32, #tpu.memory_space<vmem>>, %arg4: memref<32x64xf32, #tpu.memory_space<vmem>>, %arg5: memref<1x64xf32, #tpu.memory_space<vmem>>, %arg6: memref<64x32xf32, #tpu.memory_space<vmem>>, %arg7: memref<1x32xf32, #tpu.memory_space<vmem>>, %arg8: memref<32x16xf32, #tpu.memory_space<vmem>>, %arg9: memref<1x16xf32, #tpu.memory_space<vmem>>, %arg10: memref<1x32xf32, #tpu.memory_space<vmem>>, %arg11: memref<1x16xf32, #tpu.memory_space<vmem>>, %arg12: memref<1x1xf32, #tpu.memory_space<vmem>>, %arg13: memref<1x1x128xf32, #tpu.memory_space<vmem>>) attributes {dimension_semantics = [#tpu.dimension_semantics<parallel>], iteration_bounds = array<i64: 1>, scalar_prefetch = 0 : i64, scratch_operands = 0 : i64, tpu.core_type = #tpu.core_type<tc>, window_params = [{transform_indices = @transform_0, window_bounds = array<i64: 128, 32>}, {transform_indices = @transform_1, window_bounds = array<i64: 128, 32>}, {pipeline_mode = #tpu.pipeline_mode<synchronous>, transform_indices = @transform_2, window_bounds = array<i64: 32, 64>}, {pipeline_mode = #tpu.pipeline_mode<synchronous>, transform_indices = @transform_3, window_bounds = array<i64: 32, 64>}, {pipeline_mode = #tpu.pipeline_mode<synchronous>, transform_indices = @transform_4, window_bounds = array<i64: 1, 64>}, {pipeline_mode = #tpu.pipeline_mode<synchronous>, transform_indices = @transform_5, window_bounds = array<i64: 64, 32>}, {pipeline_mode = #tpu.pipeline_mode<synchronous>, transform_indices = @transform_6, window_bounds = array<i64: 1, 32>}, {pipeline_mode = #tpu.pipeline_mode<synchronous>, transform_indices = @transform_7, window_bounds = array<i64: 32, 16>}, {pipeline_mode = #tpu.pipeline_mode<synchronous>, transform_indices = @transform_8, window_bounds = array<i64: 1, 16>}, {pipeline_mode = #tpu.pipeline_mode<synchronous>, transform_indices = @transform_9, window_bounds = array<i64: 1, 32>}, {pipeline_mode = #tpu.pipeline_mode<synchronous>, transform_indices = @transform_10, window_bounds = array<i64: 1, 16>}, {pipeline_mode = #tpu.pipeline_mode<synchronous>, transform_indices = @transform_11, window_bounds = array<i64: 1, 1>}, {transform_indices = @transform_12, window_bounds = array<i64: 1, 1, 128>}]} {
    %c0 = arith.constant 0 : index
    %c0_0 = arith.constant 0 : index
    %0 = vector.load %arg1[%c0, %c0_0] : memref<128x32xf32, #tpu.memory_space<vmem>>, vector<128x32xf32>
    %c0_1 = arith.constant 0 : index
    %c0_2 = arith.constant 0 : index
    %1 = vector.load %arg2[%c0_1, %c0_2] : memref<128x32xf32, #tpu.memory_space<vmem>>, vector<128x32xf32>
    %c0_3 = arith.constant 0 : index
    %c0_4 = arith.constant 0 : index
    %2 = vector.load %arg3[%c0_3, %c0_4] : memref<32x64xf32, #tpu.memory_space<vmem>>, vector<32x64xf32>
    %cst = arith.constant dense<0.000000e+00> : vector<128x64xf32>
    %3 = tpu.matmul %0, %2, %cst {dimension_numbers = #tpu.dot_dimension_numbers<[1], [0], [0], [1], [0, 0, 1, 1], [], []>} : vector<128x32xf32>, vector<32x64xf32>, vector<128x64xf32> -> vector<128x64xf32>
    %c0_5 = arith.constant 0 : index
    %c0_6 = arith.constant 0 : index
    %4 = vector.load %arg4[%c0_5, %c0_6] : memref<32x64xf32, #tpu.memory_space<vmem>>, vector<32x64xf32>
    %cst_7 = arith.constant dense<0.000000e+00> : vector<128x64xf32>
    %5 = tpu.matmul %1, %4, %cst_7 {dimension_numbers = #tpu.dot_dimension_numbers<[1], [0], [0], [1], [0, 0, 1, 1], [], []>} : vector<128x32xf32>, vector<32x64xf32>, vector<128x64xf32> -> vector<128x64xf32>
    %6 = arith.addf %3, %5 : vector<128x64xf32>
    %c0_8 = arith.constant 0 : index
    %c0_9 = arith.constant 0 : index
    %7 = vector.load %arg5[%c0_8, %c0_9] : memref<1x64xf32, #tpu.memory_space<vmem>>, vector<1x64xf32>
    %8 = vector.broadcast %7 : vector<1x64xf32> to vector<128x64xf32>
    %9 = arith.addf %6, %8 : vector<128x64xf32>
    %cst_10 = arith.constant 0.000000e+00 : f32
    %10 = vector.broadcast %cst_10 : f32 to vector<128x64xf32>
    %11 = arith.maximumf %9, %10 : vector<128x64xf32>
    %c0_11 = arith.constant 0 : index
    %c0_12 = arith.constant 0 : index
    %12 = vector.load %arg6[%c0_11, %c0_12] : memref<64x32xf32, #tpu.memory_space<vmem>>, vector<64x32xf32>
    %c0_13 = arith.constant 0 : index
    %c0_14 = arith.constant 0 : index
    %13 = vector.load %arg7[%c0_13, %c0_14] : memref<1x32xf32, #tpu.memory_space<vmem>>, vector<1x32xf32>
    %cst_15 = arith.constant dense<0.000000e+00> : vector<128x32xf32>
    %14 = tpu.matmul %11, %12, %cst_15 {dimension_numbers = #tpu.dot_dimension_numbers<[1], [0], [0], [1], [0, 0, 1, 1], [], []>} : vector<128x64xf32>, vector<64x32xf32>, vector<128x32xf32> -> vector<128x32xf32>
    %15 = vector.broadcast %13 : vector<1x32xf32> to vector<128x32xf32>
    %16 = arith.addf %14, %15 : vector<128x32xf32>
    %cst_16 = arith.constant 0.000000e+00 : f32
    %17 = vector.broadcast %cst_16 : f32 to vector<128x32xf32>
    %18 = arith.maximumf %16, %17 : vector<128x32xf32>
    %c0_17 = arith.constant 0 : index
    %c0_18 = arith.constant 0 : index
    %19 = vector.load %arg8[%c0_17, %c0_18] : memref<32x16xf32, #tpu.memory_space<vmem>>, vector<32x16xf32>
    %c0_19 = arith.constant 0 : index
    %c0_20 = arith.constant 0 : index
    %20 = vector.load %arg9[%c0_19, %c0_20] : memref<1x16xf32, #tpu.memory_space<vmem>>, vector<1x16xf32>
    %cst_21 = arith.constant dense<0.000000e+00> : vector<128x16xf32>
    %21 = tpu.matmul %18, %19, %cst_21 {dimension_numbers = #tpu.dot_dimension_numbers<[1], [0], [0], [1], [0, 0, 1, 1], [], []>} : vector<128x32xf32>, vector<32x16xf32>, vector<128x16xf32> -> vector<128x16xf32>
    %22 = vector.broadcast %20 : vector<1x16xf32> to vector<128x16xf32>
    %23 = arith.addf %21, %22 : vector<128x16xf32>
    %cst_22 = arith.constant 0.000000e+00 : f32
    %24 = vector.broadcast %cst_22 : f32 to vector<128x16xf32>
    %25 = arith.maximumf %23, %24 : vector<128x16xf32>
    %c0_23 = arith.constant 0 : index
    %c0_24 = arith.constant 0 : index
    %26 = vector.load %arg10[%c0_23, %c0_24] : memref<1x32xf32, #tpu.memory_space<vmem>>, vector<1x32xf32>
    %c0_25 = arith.constant 0 : index
    %c0_26 = arith.constant 0 : index
    %27 = vector.load %arg11[%c0_25, %c0_26] : memref<1x16xf32, #tpu.memory_space<vmem>>, vector<1x16xf32>
    %c0_27 = arith.constant 0 : index
    %c0_28 = arith.constant 0 : index
    %28 = vector.load %arg12[%c0_27, %c0_28] : memref<1x1xf32, #tpu.memory_space<vmem>>, vector<1x1xf32>
    %29 = arith.mulf %0, %1 : vector<128x32xf32>
    %cst_29 = arith.constant dense<0.000000e+00> : vector<1x128xf32>
    %30 = tpu.matmul %26, %29, %cst_29 {dimension_numbers = #tpu.dot_dimension_numbers<[1], [1], [0], [0], [0, 0, 1, 0], [], []>} : vector<1x32xf32>, vector<128x32xf32>, vector<1x128xf32> -> vector<1x128xf32>
    %cst_30 = arith.constant dense<0.000000e+00> : vector<1x128xf32>
    %31 = tpu.matmul %27, %25, %cst_30 {dimension_numbers = #tpu.dot_dimension_numbers<[1], [1], [0], [0], [0, 0, 1, 0], [], []>} : vector<1x16xf32>, vector<128x16xf32>, vector<1x128xf32> -> vector<1x128xf32>
    %32 = arith.addf %30, %31 : vector<1x128xf32>
    %33 = vector.broadcast %28 : vector<1x1xf32> to vector<1x128xf32>
    %34 = arith.addf %32, %33 : vector<1x128xf32>
    %35 = vector.shape_cast %34 : vector<1x128xf32> to vector<1x1x128xf32>
    %c0_31 = arith.constant 0 : index
    %c0_32 = arith.constant 0 : index
    %c0_33 = arith.constant 0 : index
    %36 = vector.load %arg13[%c0_31, %c0_32, %c0_33] : memref<1x1x128xf32, #tpu.memory_space<vmem>>, vector<1x1x128xf32>
    tpu.vector_store %arg13[%c0_31, %c0_32, %c0_33], %35 {strides = array<i32>} : memref<1x1x128xf32, #tpu.memory_space<vmem>>, vector<1x1x128xf32>,
    return
  }
  func.func @transform_0(%arg0: i32) -> (i32, i32) {
    %c0_i32 = arith.constant 0 : i32
    %c0_i32_0 = arith.constant 0 : i32
    return %arg0, %c0_i32 : i32, i32
  }
  func.func @transform_1(%arg0: i32) -> (i32, i32) {
    %c0_i32 = arith.constant 0 : i32
    %c0_i32_0 = arith.constant 0 : i32
    return %arg0, %c0_i32 : i32, i32
  }
  func.func @transform_2(%arg0: i32) -> (i32, i32) {
    %c0_i32 = arith.constant 0 : i32
    %c0_i32_0 = arith.constant 0 : i32
    %c0_i32_1 = arith.constant 0 : i32
    return %c0_i32, %c0_i32_0 : i32, i32
  }
  func.func @transform_3(%arg0: i32) -> (i32, i32) {
    %c0_i32 = arith.constant 0 : i32
    %c0_i32_0 = arith.constant 0 : i32
    %c0_i32_1 = arith.constant 0 : i32
    return %c0_i32, %c0_i32_0 : i32, i32
  }
  func.func @transform_4(%arg0: i32) -> (i32, i32) {
    %c0_i32 = arith.constant 0 : i32
    %c0_i32_0 = arith.constant 0 : i32
    %c0_i32_1 = arith.constant 0 : i32
    return %c0_i32, %c0_i32_0 : i32, i32
  }
  func.func @transform_5(%arg0: i32) -> (i32, i32) {
    %c0_i32 = arith.constant 0 : i32
    %c0_i32_0 = arith.constant 0 : i32
    %c0_i32_1 = arith.constant 0 : i32
    return %c0_i32, %c0_i32_0 : i32, i32
  }
  func.func @transform_6(%arg0: i32) -> (i32, i32) {
    %c0_i32 = arith.constant 0 : i32
    %c0_i32_0 = arith.constant 0 : i32
    %c0_i32_1 = arith.constant 0 : i32
    return %c0_i32, %c0_i32_0 : i32, i32
  }
  func.func @transform_7(%arg0: i32) -> (i32, i32) {
    %c0_i32 = arith.constant 0 : i32
    %c0_i32_0 = arith.constant 0 : i32
    %c0_i32_1 = arith.constant 0 : i32
    return %c0_i32, %c0_i32_0 : i32, i32
  }
  func.func @transform_8(%arg0: i32) -> (i32, i32) {
    %c0_i32 = arith.constant 0 : i32
    %c0_i32_0 = arith.constant 0 : i32
    %c0_i32_1 = arith.constant 0 : i32
    return %c0_i32, %c0_i32_0 : i32, i32
  }
  func.func @transform_9(%arg0: i32) -> (i32, i32) {
    %c0_i32 = arith.constant 0 : i32
    %c0_i32_0 = arith.constant 0 : i32
    %c0_i32_1 = arith.constant 0 : i32
    return %c0_i32, %c0_i32_0 : i32, i32
  }
  func.func @transform_10(%arg0: i32) -> (i32, i32) {
    %c0_i32 = arith.constant 0 : i32
    %c0_i32_0 = arith.constant 0 : i32
    %c0_i32_1 = arith.constant 0 : i32
    return %c0_i32, %c0_i32_0 : i32, i32
  }
  func.func @transform_11(%arg0: i32) -> (i32, i32) {
    %c0_i32 = arith.constant 0 : i32
    %c0_i32_0 = arith.constant 0 : i32
    %c0_i32_1 = arith.constant 0 : i32
    return %c0_i32, %c0_i32_0 : i32, i32
  }
  func.func @transform_12(%arg0: i32) -> (i32, i32, i32) {
    %c0_i32 = arith.constant 0 : i32
    %c0_i32_0 = arith.constant 0 : i32
    %c0_i32_1 = arith.constant 0 : i32
    return %arg0, %c0_i32, %c0_i32_0 : i32, i32, i32
  }
}

</mosaic_0001>

<bundles_post_ra>
// kernel: neumf_forward.1
= control target key start
LH: loop header
LB: loop body
LE: loop exit
PB: predicated region body
PF: predicated region fallthrough
CT: control target
= control target key end

     0   :  { %vm83_vm0 = vcmask 261120   ;;  %vm524_vm1 = vcmask 523264   ;;  %vm1782_vm3 = vmmov 0   ;;  %vm973_vm4 = vcmask 130048   ;;  %s2291_s3 = inlined_call_operand.vmem [shape: f32[32,64], index: 3, kind: input, shape index: {}]   ;;  %s2292_s0 = inlined_call_operand.vmem [shape: f32[128,32], index: 0, kind: input, shape index: {}]   ;;  %s2293_s1 = inlined_call_operand.vmem [shape: f32[128,32], index: 1, kind: input, shape index: {}]   ;;  %s2294_s2 = inlined_call_operand.vmem [shape: f32[32,64], index: 2, kind: input, shape index: {}]   ;;  %s2295_s5 = inlined_call_operand.vmem [shape: f32[64,32], index: 5, kind: input, shape index: {}]   ;;  %s2296_s7 = inlined_call_operand.vmem [shape: f32[32,16], index: 7, kind: input, shape index: {}]   ;;  %s2297_s4 = inlined_call_operand.vmem [shape: f32[1,64], index: 4, kind: input, shape index: {}]   ;;  %s2298_s6 = inlined_call_operand.vmem [shape: f32[1,32], index: 6, kind: input, shape index: {}]   ;;  %s2299_s9 = inlined_call_operand.vmem [shape: f32[1,32], index: 9, kind: input, shape index: {}]   ;;  %s2300_s11 = inlined_call_operand.<no memory space> [shape: f32[1,1], index: 11, kind: input, shape index: {}]   ;;  %s2301_s8 = inlined_call_operand.vmem [shape: f32[1,16], index: 8, kind: input, shape index: {}]   ;;  %s2302_s10 = inlined_call_operand.vmem [shape: f32[1,16], index: 10, kind: input, shape index: {}]   ;;  %s2303_s12 = inlined_call_operand.vmem [shape: f32[1,1,128], index: 12, kind: output, shape index: {}]  }
   0x1   :  { %v79_v0 = vld [vmem:[%s2291_s3] sm:$0xff]  ;;  %v80_v1 = vld [vmem:[%s2291_s3 + $0x8] sm:$0xff]  ;;  %v81_v2 = vld [vmem:[%s2291_s3 + $0x10] sm:$0xff] }
   0x2   :  { %v1656_v3 = vpack.c.bf16 %v80_v1, %v79_v0  ;;  %v82_v4 = vld [vmem:[%s2291_s3 + $0x18] sm:$0xff]  ;;  %v1865_v5 = vld [vmem:[%s2292_s0] sm:$0xff]  ;;  %v1870_v6 = vld [vmem:[%s2292_s0 + $0x8] sm:$0xff] }
   0x3   :  { %v1660_v7 = vpack.c.bf16 %v82_v4, %v81_v2  ;;  %v59_v8 = vld [vmem:[%s2293_s1] sm:$0xff]  ;;  %v60_v9 = vld [vmem:[%s2293_s1 + $0x8] sm:$0xff]  ;;  %v61_v16 = vld [vmem:[%s2293_s1 + $0x10] sm:$0xff] }
   0x4   :  { %v75_v10 = vld [vmem:[%s2294_s2] sm:$0xff]  ;;  %1657 = vmatprep.subr.bf16.mxu0 %v1656_v3  ;;  %1458 = vmatprep.mubr.msk.f32.mxu0 %vm83_vm0, %v59_v8  ;;  %v1883_v11 = vmul.f32 %v59_v8, %v1865_v5  ;;  %v1886_v12 = vmul.f32 %v60_v9, %v1870_v6  ;;  %v76_v13 = vld [vmem:[%s2294_s2 + $0x8] sm:$0xff]  ;;  %v77_v17 = vld [vmem:[%s2294_s2 + $0x10] sm:$0xff] }
   0x5   :  { %1659 = vmatpush3.bf16.msra.mxu0 %v1656_v3  ;;  %v1664_v15 = vpack.c.bf16 %v76_v13, %v75_v10  ;;  %v78_v18 = vld [vmem:[%s2294_s2 + $0x18] sm:$0xff]  ;;  %v63_v20 = vld [vmem:[%s2293_s1 + $0x20] sm:$0xff]  ;;  %v1911_v21 = vld [vmem:[%s2293_s1 + $0x28] sm:$0xff] }
   0x6   :  { %1661 = vmatprep.subr.bf16.mxu0 %v1660_v7  ;;  %v1729_v14 = vpack.c.bf16 %v1886_v12, %v1883_v11  ;;  %v62_v19 = vld [vmem:[%s2293_s1 + $0x18] sm:$0xff]  ;;  %v1916_v22 = vld [vmem:[%s2293_s1 + $0x30] sm:$0xff]  ;;  %v1926_v24 = vld [vmem:[%s2293_s1 + $0x40] sm:$0xff]  ;;  %v1668_v27 = vpack.c.bf16 %v78_v18, %v77_v17  ;;  %v1783_v11 = vmov 0.0  }
   0x7   :  { %v1921_v23 = vld [vmem:[%s2293_s1 + $0x38] sm:$0xff]  ;;  %v1931_v25 = vld [vmem:[%s2292_s0 + $0x10] sm:$0xff]  ;;  %v1936_v26 = vld [vmem:[%s2293_s1 + $0x48] sm:$0xff] }
   0x8   :  { %v1939_v28 = vmul.f32 %v61_v16, %v1931_v25  ;;  %v1944_v29 = vld [vmem:[%s2292_s0 + $0x18] sm:$0xff]  ;;  %v1949_v30 = vld [vmem:[%s2292_s0 + $0x20] sm:$0xff]  ;;  %v1954_v31 = vld [vmem:[%s2292_s0 + $0x28] sm:$0xff] }
   0x9   :  { %1663 = vmatpush3.bf16.msra.mxu0 %v1660_v7  ;;  %v1959_v32 = vld [vmem:[%s2293_s1 + $0x50] sm:$0xff]  ;;  %v1964_v33 = vld [vmem:[%s2293_s1 + $0x58] sm:$0xff]  ;;  %v1969_v34 = vld [vmem:[%s2293_s1 + $0x60] sm:$0xff]  ;;  %v1972_v35 = vmul.f32 %v62_v19, %v1944_v29  ;;  %v1975_v36 = vmul.f32 %v63_v20, %v1949_v30  ;;  %v1979_v37 = vmul.f32 %v1911_v21, %v1954_v31 }
   0xa   :  { %1665 = vmatprep.subr.bf16.mxu0 %v1664_v15  ;;  %v1984_v38 = vld [vmem:[%s2292_s0 + $0x30] sm:$0xff]  ;;  %v1989_v39 = vld [vmem:[%s2292_s0 + $0x38] sm:$0xff]  ;;  %v1994_v40 = vld [vmem:[%s2292_s0 + $0x40] sm:$0xff] }
   0xb   :  { %v72_v41 = vld [vmem:[%s2293_s1 + $0x68] sm:$0xff]  ;;  %v73_v42 = vld [vmem:[%s2293_s1 + $0x70] sm:$0xff]  ;;  %v74_v43 = vld [vmem:[%s2293_s1 + $0x78] sm:$0xff]  ;;  %v2008_v44 = vmul.f32 %v1916_v22, %v1984_v38  ;;  %v2012_v45 = vmul.f32 %v1921_v23, %v1989_v39  ;;  %v2016_v46 = vmul.f32 %v1926_v24, %v1994_v40  ;;  %v1733_v50 = vpack.c.bf16 %v1972_v35, %v1939_v28 }
   0xc   :  { %1459 = vmatmul.mubr.msk.f32.vlgmr.msra.gmra.mrb[0].mxu0 %vm83_vm0, %v60_v9  ;;  %v52_v47 = vld [vmem:[%s2292_s0 + $0x48] sm:$0xff]  ;;  %v53_v48 = vld [vmem:[%s2292_s0 + $0x50] sm:$0xff]  ;;  %v54_v49 = vld [vmem:[%s2292_s0 + $0x58] sm:$0xff]  ;;  %v1737_v51 = vpack.c.bf16 %v1979_v37, %v1975_v36  ;;  %v17_v28 = vstv %s2300_s11 }
   0xd   :  { %1667 = vmatpush3.bf16.msra.mxu0 %v1664_v15  ;;  %1461 = vmatprep.mubr.msk.f32.mxu0 %vm83_vm0, %v61_v16  ;;  %v2033_v52 = vmul.f32 %v1936_v26, %v52_v47  ;;  %v55_v53 = vld [vmem:[%s2292_s0 + $0x60] sm:$0xff]  ;;  %v56_v54 = vld [vmem:[%s2292_s0 + $0x68] sm:$0xff]  ;;  %v57_v55 = vld [vmem:[%s2292_s0 + $0x70] sm:$0xff]  ;;  %v1741_v56 = vpack.c.bf16 %v2012_v45, %v2008_v44  ;;  %v2047_v57 = vmul.f32 %v1959_v32, %v53_v48 }
   0xe   :  { %1669 = vmatprep.subr.bf16.mxu0 %v1668_v27  ;;  %v2050_v58 = vmul.f32 %v1964_v33, %v54_v49  ;;  %v2053_v59 = vmul.f32 %v1969_v34, %v55_v53  ;;  %v58_v60 = vld [vmem:[%s2292_s0 + $0x78] sm:$0xff]  ;;  %v509_v61 = vld [vmem:[%s2295_s5] sm:$0xff]  ;;  %v510_v62 = vld [vmem:[%s2295_s5 + $0x8] sm:$0xff]  ;;  %v2066_v0 = vmul.f32 %v72_v41, %v56_v54  ;;  %v2068_v1 = vmul.f32 %v73_v42, %v57_v55 }
   0xf   :  { %v1745_v63 = vpack.c.bf16 %v2033_v52, %v2016_v46  ;;  %v2070_v2 = vmul.f32 %v74_v43, %v58_v60  ;;  %v511_v3 = vld [vmem:[%s2295_s5 + $0x10] sm:$0xff]  ;;  %v512_v4 = vld [vmem:[%s2295_s5 + $0x18] sm:$0xff]  ;;  %v1672_v8 = vpack.c.bf16 %v510_v62, %v509_v61  ;;  %v513_v15 = vld [vmem:[%s2295_s5 + $0x20] sm:$0xff]  ;;  %18 = vst [vmem:[#allocation2] sm:$0x1] %v17_v28  ;;  %v1221_v28 = vlaneseq }
  0x10   :  { %1462 = vmatmul.mubr.msk.f32.gmra.mrb[2].mxu0 %vm83_vm0, %v62_v19  ;;  %v1749_v7 = vpack.c.bf16 %v2050_v58, %v2047_v57  ;;  %v1676_v9 = vpack.c.bf16 %v512_v4, %v511_v3  ;;  %v1753_v10 = vpack.c.bf16 %v2066_v0, %v2053_v59  ;;  %v514_v16 = vld [vmem:[%s2295_s5 + $0x28] sm:$0xff]  ;;  %v734_v19 = vld [vmem:[%s2296_s7] sm:$0xff]  ;;  %vm1730_vm2 = vmpackc.low %vm83_vm0, %vm83_vm0 }
  0x11   :  { %1464 = vmatprep.mubr.msk.f32.mxu0 %vm83_vm0, %v63_v20  ;;  %1671 = vmatpush3.bf16.msra.mxu0 %v1668_v27  ;;  %v1757_v13 = vpack.c.bf16 %v2070_v2, %v2068_v1  ;;  %v1680_v17 = vpack.c.bf16 %v514_v16, %v513_v15  ;;  %v735_v20 = vld [vmem:[%s2296_s7 + $0x8] sm:$0xff]  ;;  %v736_v27 = vld [vmem:[%s2296_s7 + $0x10] sm:$0xff]  ;;  %v954_v12 = vld [vmem:[%s2299_s9] sm:$0x1] }
  0x12   :  { %1673 = vmatprep.subr.bf16.mxu1 %v1672_v8  ;;  %v1281_v36 = vld [vmem:[%s2301_s8] ss:$0 sm:$0xff]  ;;  %vm2257_vm5 = vmpackc.low %vm973_vm4, %vm973_vm4 }
  0x13   :  { %1675 = vmatpush3.bf16.msra.mxu1 %v1672_v8 }
  0x14   :  { %1465 = vmatmul.mubr.msk.f32.gmra.mrb[4].mxu0 %vm83_vm0, %v1911_v21  ;;  %1677 = vmatprep.subr.bf16.mxu1 %v1676_v9  ;;  %v1688_v21 = vpack.c.bf16 %v735_v20, %v734_v19 }
  0x15   :  { %1467 = vmatprep.mubr.msk.f32.mxu0 %vm83_vm0, %v1916_v22  ;;  %v2151_v22 = vld [vmem:[%s2297_s4] ss:$0 sm:$0xff] }
  0x16   :  { %v956_v35 = vld [vmem:[#allocation2] sm:$0x1] }
  0x17   :  { %1679 = vmatpush3.bf16.msra.mxu1 %v1676_v9 }
  0x18   :  { %1468 = vmatmul.mubr.msk.f32.gmra.mrb[6].mxu0 %vm83_vm0, %v1921_v23  ;;  %1681 = vmatprep.subr.bf16.mxu1 %v1680_v17 }
  0x19   :  { %1470 = vmatprep.mubr.msk.f32.mxu0 %vm83_vm0, %v1926_v24 }
  0x1b   :  { %1683 = vmatpush3.bf16.msra.mxu1 %v1680_v17 }
  0x1c   :  { %1471 = vmatmul.mubr.msk.f32.gmra.mrb[8].mxu0 %vm83_vm0, %v1936_v26 }
  0x1d   :  { %1473 = vmatprep.mubr.msk.f32.mxu0 %vm83_vm0, %v1959_v32 }
  0x20   :  { %1474 = vmatmul.mubr.msk.f32.gmra.mrb[10].mxu0 %vm83_vm0, %v1964_v33 }
  0x21   :  { %1476 = vmatprep.mubr.msk.f32.mxu0 %vm83_vm0, %v1969_v34 }
  0x24   :  { %1477 = vmatmul.mubr.msk.f32.gmra.mrb[12].mxu0 %vm83_vm0, %v72_v41 }
  0x25   :  { %1479 = vmatprep.mubr.msk.f32.mxu0 %vm83_vm0, %v73_v42 }
  0x28   :  { %1480 = vmatmul.mubr.msk.f32.gmra.mrb[14].mxu0 %vm83_vm0, %v74_v43 }
  0x29   :  { %1490 = vmatprep.mubr.msk.f32.mxu0 %vm83_vm0, %v1865_v5  ;;  %v515_v5 = vld [vmem:[%s2295_s5 + $0x30] sm:$0xff] }
  0x2c   :  { %1491 = vmatmul.mubr.msk.f32.vlgmr.msra.gmra.mrb[0].mxu0 %vm83_vm0, %v1870_v6  ;;  %v516_v6 = vld [vmem:[%s2295_s5 + $0x38] sm:$0xff] }
  0x2d   :  { %1493 = vmatprep.mubr.msk.f32.mxu0 %vm83_vm0, %v1931_v25  ;;  %v1684_v18 = vpack.c.bf16 %v516_v6, %v515_v5 }
  0x2f   :  { %1685 = vmatprep.subr.bf16.mxu1 %v1684_v18 }
  0x30   :  { %1494 = vmatmul.mubr.msk.f32.gmra.mrb[2].mxu0 %vm83_vm0, %v1944_v29  ;;  %1687 = vmatpush3.bf16.msra.mxu1 %v1684_v18  ;;  %v737_v29 = vld [vmem:[%s2296_s7 + $0x18] sm:$0xff] }
  0x31   :  { %1496 = vmatprep.mubr.msk.f32.mxu0 %vm83_vm0, %v1949_v30  ;;  %1689 = vmatprep.subr.bf16.mxu1 %v1688_v21 }
  0x34   :  { %1497 = vmatmul.mubr.msk.f32.gmra.mrb[4].mxu0 %vm83_vm0, %v1954_v31 }
  0x35   :  { %1499 = vmatprep.mubr.msk.f32.mxu0 %vm83_vm0, %v1984_v38  ;;  %v1692_v38 = vpack.c.bf16 %v737_v29, %v736_v27 }
  0x38   :  { %1500 = vmatmul.mubr.msk.f32.gmra.mrb[6].mxu0 %vm83_vm0, %v1989_v39 }
  0x39   :  { %1502 = vmatprep.mubr.msk.f32.mxu0 %vm83_vm0, %v1994_v40 }
  0x3c   :  { %1503 = vmatmul.mubr.msk.f32.gmra.mrb[8].mxu0 %vm83_vm0, %v52_v47 }
  0x3d   :  { %1505 = vmatprep.mubr.msk.f32.mxu0 %vm83_vm0, %v53_v48 }
  0x40   :  { %1506 = vmatmul.mubr.msk.f32.gmra.mrb[10].mxu0 %vm83_vm0, %v54_v49 }
  0x41   :  { %1508 = vmatprep.mubr.msk.f32.mxu0 %vm83_vm0, %v55_v53 }
  0x44   :  { %1509 = vmatmul.mubr.msk.f32.gmra.mrb[12].mxu0 %vm83_vm0, %v56_v54 }
  0x45   :  { %1511 = vmatprep.mubr.msk.f32.mxu0 %vm83_vm0, %v57_v55 }
  0x48   :  { %1512 = vmatmul.mubr.msk.f32.gmra.mrb[14].mxu0 %vm83_vm0, %v58_v60 }
  0x49   :  { %1618 = vmatprep.mubr.msk.f32.mxu0 %vm1782_vm3, %v1783_v11 }
  0xff   :  { %v1492_v23 = vpop.f32.mrb[0].mxu0 }
 0x100   :  { %v478_v24 = vadd.f32 %v1492_v23, %v2151_v22  ;;  %v391_v25 = vpop.f32.mrb[1].mxu0 }
 0x101   :  { %v477_v26 = vadd.f32 %v2151_v22, %v391_v25 }
 0x102   :  { %v494_v32 = vmax.f32 %v478_v24, 0.0 }
 0x103   :  { %v493_v30 = vmax.f32 %v477_v26, 0.0  ;;  %v1495_v31 = vpop.f32.mrb[2].mxu0 }
 0x104   :  { %v480_v33 = vadd.f32 %v1495_v31, %v2151_v22  ;;  %v401_v34 = vpop.f32.mrb[3].mxu0 }
 0x105   :  { %v479_v39 = vadd.f32 %v2151_v22, %v401_v34  ;;  %1530 = vmatprep.mubr.msk.f32.mxu1 %vm524_vm1, %v493_v30 }
 0x106   :  { %1531 = vmatmul.mubr.msk.f32.vlgmr.msra.gmra.mrb[0].mxu1 %vm524_vm1, %v494_v32  ;;  %v496_v42 = vmax.f32 %v480_v33, 0.0 }
 0x107   :  { %v495_v40 = vmax.f32 %v479_v39, 0.0  ;;  %v1498_v41 = vpop.f32.mrb[4].mxu0  ;;  %1691 = vmatpush3.bf16.msra.mxu1 %v1688_v21  ;;  %v1264_v39 = vld [vmem:[%s2298_s6] ss:$0 sm:$0xff] }
 0x108   :  { %v482_v43 = vadd.f32 %v1498_v41, %v2151_v22  ;;  %v411_v47 = vpop.f32.mrb[5].mxu0  ;;  %1693 = vmatprep.subr.bf16.mxu1 %v1692_v38 }
 0x109   :  { %v481_v48 = vadd.f32 %v2151_v22, %v411_v47  ;;  %1533 = vmatprep.mubr.msk.f32.mxu1 %vm524_vm1, %v495_v40 }
 0x10a   :  { %1534 = vmatmul.mubr.msk.f32.gmra.mrb[2].mxu1 %vm524_vm1, %v496_v42  ;;  %v498_v54 = vmax.f32 %v482_v43, 0.0 }
 0x10b   :  { %v497_v49 = vmax.f32 %v481_v48, 0.0  ;;  %v1501_v53 = vpop.f32.mrb[6].mxu0  ;;  %1695 = vmatpush3.bf16.msra.mxu1 %v1692_v38 }
 0x10c   :  { %v484_v55 = vadd.f32 %v1501_v53, %v2151_v22  ;;  %v421_v60 = vpop.f32.mrb[7].mxu0 }
 0x10d   :  { %v483_v61 = vadd.f32 %v2151_v22, %v421_v60  ;;  %1536 = vmatprep.mubr.msk.f32.mxu1 %vm524_vm1, %v497_v49 }
 0x10e   :  { %1537 = vmatmul.mubr.msk.f32.gmra.mrb[4].mxu1 %vm524_vm1, %v498_v54  ;;  %v500_v4 = vmax.f32 %v484_v55, 0.0 }
 0x10f   :  { %v499_v62 = vmax.f32 %v483_v61, 0.0  ;;  %v1504_v3 = vpop.f32.mrb[8].mxu0 }
 0x110   :  { %v486_v8 = vadd.f32 %v1504_v3, %v2151_v22  ;;  %v431_v9 = vpop.f32.mrb[9].mxu0 }
 0x111   :  { %v485_v15 = vadd.f32 %v2151_v22, %v431_v9  ;;  %1539 = vmatprep.mubr.msk.f32.mxu1 %vm524_vm1, %v499_v62 }
 0x112   :  { %1540 = vmatmul.mubr.msk.f32.gmra.mrb[6].mxu1 %vm524_vm1, %v500_v4  ;;  %v502_v5 = vmax.f32 %v486_v8, 0.0 }
 0x113   :  { %v501_v16 = vmax.f32 %v485_v15, 0.0  ;;  %v1507_v17 = vpop.f32.mrb[10].mxu0 }
 0x114   :  { %v488_v6 = vadd.f32 %v1507_v17, %v2151_v22  ;;  %v441_v18 = vpop.f32.mrb[11].mxu0 }
 0x115   :  { %v487_v19 = vadd.f32 %v2151_v22, %v441_v18  ;;  %1542 = vmatprep.mubr.msk.f32.mxu1 %vm524_vm1, %v501_v16 }
 0x116   :  { %1543 = vmatmul.mubr.msk.f32.gmra.mrb[8].mxu1 %vm524_vm1, %v502_v5  ;;  %v504_v23 = vmax.f32 %v488_v6, 0.0 }
 0x117   :  { %v503_v20 = vmax.f32 %v487_v19, 0.0  ;;  %v1510_v21 = vpop.f32.mrb[12].mxu0 }
 0x118   :  { %v490_v24 = vadd.f32 %v1510_v21, %v2151_v22  ;;  %v451_v25 = vpop.f32.mrb[13].mxu0 }
 0x119   :  { %v489_v26 = vadd.f32 %v2151_v22, %v451_v25  ;;  %1545 = vmatprep.mubr.msk.f32.mxu1 %vm524_vm1, %v503_v20 }
 0x11a   :  { %1546 = vmatmul.mubr.msk.f32.gmra.mrb[10].mxu1 %vm524_vm1, %v504_v23  ;;  %v506_v30 = vmax.f32 %v490_v24, 0.0 }
 0x11b   :  { %v505_v27 = vmax.f32 %v489_v26, 0.0  ;;  %v1513_v29 = vpop.f32.mrb[14].mxu0 }
 0x11c   :  { %v492_v31 = vadd.f32 %v1513_v29, %v2151_v22  ;;  %v461_v32 = vpop.f32.mrb[15].mxu0 }
 0x11d   :  { %v491_v33 = vadd.f32 %v2151_v22, %v461_v32  ;;  %1548 = vmatprep.mubr.msk.f32.mxu1 %vm524_vm1, %v505_v27 }
 0x11e   :  { %1549 = vmatmul.mubr.msk.f32.gmra.mrb[12].mxu1 %vm524_vm1, %v506_v30  ;;  %v508_v38 = vmax.f32 %v492_v31, 0.0 }
 0x11f   :  { %v507_v34 = vmax.f32 %v491_v33, 0.0 }
 0x121   :  { %1551 = vmatprep.mubr.msk.f32.mxu1 %vm524_vm1, %v507_v34 }
 0x122   :  { %1552 = vmatmul.mubr.msk.f32.gmra.mrb[14].mxu1 %vm524_vm1, %v508_v38 }
 0x1d9   :  { %v1532_v40 = vpop.f32.mrb[0].mxu1 }
 0x1da   :  { %v645_v41 = vadd.f32 %v1532_v40, %v1264_v39  ;;  %v639_v42 = vpop.f32.mrb[1].mxu1 }
 0x1db   :  { %v640_v43 = vadd.f32 %v1264_v39, %v639_v42 }
 0x1dc   :  { %v719_v48 = vmax.f32 %v645_v41, 0.0 }
 0x1dd   :  { %v718_v47 = vmax.f32 %v640_v43, 0.0  ;;  %v1535_v22 = vpop.f32.mrb[2].mxu1 }
 0x1de   :  { %v655_v49 = vadd.f32 %v1535_v22, %v1264_v39  ;;  %v649_v53 = vpop.f32.mrb[3].mxu1 }
 0x1df   :  { %v650_v54 = vadd.f32 %v1264_v39, %v649_v53  ;;  %1562 = vmatprep.mubr.msk.f32.mxu1 %vm83_vm0, %v718_v47 }
 0x1e0   :  { %1563 = vmatmul.mubr.msk.f32.vlgmr.msra.gmra.mrb[16].mxu1 %vm83_vm0, %v719_v48  ;;  %v721_v61 = vmax.f32 %v655_v49, 0.0 }
 0x1e1   :  { %v720_v55 = vmax.f32 %v650_v54, 0.0  ;;  %v1538_v60 = vpop.f32.mrb[4].mxu1  ;;  %v1781_v54 = vmov 0.0|0.0  }
 0x1e2   :  { %v665_v62 = vadd.f32 %v1538_v60, %v1264_v39  ;;  %v659_v3 = vpop.f32.mrb[5].mxu1  ;;  %1696 = vmatprep.subr.bf16.mxu0 %v1781_v54  ;;  %1728 = vmatprep.subr.bf16.mxu1 %v1781_v54 }
 0x1e3   :  { %v660_v4 = vadd.f32 %v1264_v39, %v659_v3  ;;  %1565 = vmatprep.mubr.msk.f32.mxu1 %vm83_vm0, %v720_v55  ;;  %1731 = vmatpush3.bf16.xpose.msk.msra.mxu1 %vm1730_vm2, %v1729_v14  ;;  %v1784_v14 = vmov 0  }
 0x1e4   :  { %1566 = vmatmul.mubr.msk.f32.gmra.mrb[18].mxu1 %vm83_vm0, %v721_v61  ;;  %v723_v15 = vmax.f32 %v665_v62, 0.0  ;;  %1732 = vmatprep.subr.bf16.mxu1 %v1781_v54 }
 0x1e5   :  { %v722_v8 = vmax.f32 %v660_v4, 0.0  ;;  %v1541_v9 = vpop.f32.mrb[6].mxu1  ;;  %1780 = vset.pattern.permute.xlu0 %v1784_v14 }
 0x1e6   :  { %v675_v16 = vadd.f32 %v1541_v9, %v1264_v39  ;;  %v669_v17 = vpop.f32.mrb[7].mxu1  ;;  %1218 = vperm.xlu0 %1780, %v956_v35   ;;  %v1222_v35 = vshrl.u32 %v1221_v28, 7 }
 0x1e7   :  { %v670_v5 = vadd.f32 %v1264_v39, %v669_v17  ;;  %1568 = vmatprep.mubr.msk.f32.mxu1 %vm83_vm0, %v722_v8 }
 0x1e8   :  { %1569 = vmatmul.mubr.msk.f32.gmra.mrb[20].mxu1 %vm83_vm0, %v723_v15  ;;  %v725_v19 = vmax.f32 %v675_v16, 0.0 }
 0x1e9   :  { %v724_v6 = vmax.f32 %v670_v5, 0.0  ;;  %v1544_v18 = vpop.f32.mrb[8].mxu1 }
 0x1ea   :  { %v685_v20 = vadd.f32 %v1544_v18, %v1264_v39  ;;  %v679_v21 = vpop.f32.mrb[9].mxu1 }
 0x1eb   :  { %v680_v23 = vadd.f32 %v1264_v39, %v679_v21  ;;  %1571 = vmatprep.mubr.msk.f32.mxu1 %vm83_vm0, %v724_v6  ;;  %1735 = vmatpush3.bf16.xpose.msk.msra.mxu1 %vm1730_vm2, %v1733_v50 }
 0x1ec   :  { %1572 = vmatmul.mubr.msk.f32.gmra.mrb[22].mxu1 %vm83_vm0, %v725_v19  ;;  %v727_v26 = vmax.f32 %v685_v20, 0.0  ;;  %1736 = vmatprep.subr.bf16.mxu1 %v1781_v54 }
 0x1ed   :  { %v726_v24 = vmax.f32 %v680_v23, 0.0  ;;  %v1547_v25 = vpop.f32.mrb[10].mxu1 }
 0x1ee   :  { %v695_v27 = vadd.f32 %v1547_v25, %v1264_v39  ;;  %v689_v29 = vpop.f32.mrb[11].mxu1 }
 0x1ef   :  { %v690_v30 = vadd.f32 %v1264_v39, %v689_v29  ;;  %1574 = vmatprep.mubr.msk.f32.mxu1 %vm83_vm0, %v726_v24 }
 0x1f0   :  { %1575 = vmatmul.mubr.msk.f32.gmra.mrb[24].mxu1 %vm83_vm0, %v727_v26  ;;  %v729_v33 = vmax.f32 %v695_v27, 0.0 }
 0x1f1   :  { %v728_v31 = vmax.f32 %v690_v30, 0.0  ;;  %v1550_v32 = vpop.f32.mrb[12].mxu1 }
 0x1f2   :  { %v705_v34 = vadd.f32 %v1550_v32, %v1264_v39  ;;  %v699_v38 = vpop.f32.mrb[13].mxu1 }
 0x1f3   :  { %v700_v40 = vadd.f32 %v1264_v39, %v699_v38  ;;  %1577 = vmatprep.mubr.msk.f32.mxu1 %vm83_vm0, %v728_v31  ;;  %1739 = vmatpush3.bf16.xpose.msk.msra.mxu1 %vm1730_vm2, %v1737_v51 }
 0x1f4   :  { %1578 = vmatmul.mubr.msk.f32.gmra.mrb[26].mxu1 %vm83_vm0, %v729_v33  ;;  %v731_v43 = vmax.f32 %v705_v34, 0.0  ;;  %1740 = vmatprep.subr.bf16.mxu1 %v1781_v54 }
 0x1f5   :  { %v730_v41 = vmax.f32 %v700_v40, 0.0  ;;  %v1553_v42 = vpop.f32.mrb[14].mxu1 }
 0x1f6   :  { %v715_v47 = vadd.f32 %v1553_v42, %v1264_v39  ;;  %v709_v22 = vpop.f32.mrb[15].mxu1 }
 0x1f7   :  { %v710_v48 = vadd.f32 %v1264_v39, %v709_v22  ;;  %1580 = vmatprep.mubr.msk.f32.mxu1 %vm83_vm0, %v730_v41 }
 0x1f8   :  { %1581 = vmatmul.mubr.msk.f32.gmra.mrb[28].mxu1 %vm83_vm0, %v731_v43  ;;  %v733_v53 = vmax.f32 %v715_v47, 0.0 }
 0x1f9   :  { %v732_v49 = vmax.f32 %v710_v48, 0.0 }
 0x1fb   :  { %1583 = vmatprep.mubr.msk.f32.mxu1 %vm83_vm0, %v732_v49  ;;  %1743 = vmatpush3.bf16.xpose.msk.msra.mxu1 %vm1730_vm2, %v1741_v56 }
 0x1fc   :  { %1584 = vmatmul.mubr.msk.f32.gmra.mrb[30].mxu1 %vm83_vm0, %v733_v53  ;;  %1744 = vmatprep.subr.bf16.mxu1 %v1781_v54 }
 0x1fd   :  { %1653 = vmatprep.mubr.msk.f32.mxu1 %vm1782_vm3, %v1783_v11  ;;  %v955_v11 = vld [vmem:[%s2302_s10] sm:$0x1] }
 0x203   :  { %1747 = vmatpush3.bf16.xpose.msk.msra.mxu1 %vm1730_vm2, %v1745_v63 }
 0x204   :  { %1748 = vmatprep.subr.bf16.mxu1 %v1781_v54 }
 0x20b   :  { %1751 = vmatpush3.bf16.xpose.msk.msra.mxu1 %vm1730_vm2, %v1749_v7 }
 0x20c   :  { %1752 = vmatprep.subr.bf16.mxu1 %v1781_v54 }
 0x213   :  { %1755 = vmatpush3.bf16.xpose.msk.msra.mxu1 %vm1730_vm2, %v1753_v10 }
 0x214   :  { %1756 = vmatprep.subr.bf16.mxu1 %v1781_v54 }
 0x21b   :  { %1759 = vmatpush3.bf16.xpose.msk.msra.mxu1 %vm1730_vm2, %v1757_v13 }
 0x222   :  { %1654 = vmatmul.mubr.msk.f32.vlgmr.msra.gmra.mrb[32].mxu1 %vm83_vm0, %v954_v12 }
 0x2b3   :  { %v1564_v37 = vpop.f32.mrb[16].mxu1 }
 0x2b4   :  { %v865_v44 = vadd.f32 %v1564_v37, %v1281_v36  ;;  %v859_v45 = vpop.f32.mrb[17].mxu1  ;;  %v1219_v37 = vpop.permute.xlu0 %1218 }
 0x2b5   :  { %v860_v46 = vadd.f32 %v1281_v36, %v859_v45 }
 0x2b6   :  { %v939_v50 = vmax.f32 %v865_v44, 0.0 }
 0x2b7   :  { %v938_v51 = vmax.f32 %v860_v46, 0.0  ;;  %v1567_v52 = vpop.f32.mrb[18].mxu1 }
 0x2b8   :  { %v875_v56 = vadd.f32 %v1567_v52, %v1281_v36  ;;  %v869_v57 = vpop.f32.mrb[19].mxu1 }
 0x2b9   :  { %v1697_v59 = vpack.c.bf16 %v939_v50, %v938_v51  ;;  %v870_v63 = vadd.f32 %v1281_v36, %v869_v57 }
 0x2ba   :  { %v941_v0 = vmax.f32 %v875_v56, 0.0 }
 0x2bb   :  { %v940_v1 = vmax.f32 %v870_v63, 0.0  ;;  %v1570_v2 = vpop.f32.mrb[20].mxu1  ;;  %1699 = vmatpush3.bf16.xpose.msk.msra.mxu0 %vm2257_vm5, %v1697_v59 }
 0x2bc   :  { %v885_v7 = vadd.f32 %v1570_v2, %v1281_v36  ;;  %v879_v10 = vpop.f32.mrb[21].mxu1  ;;  %1700 = vmatprep.subr.bf16.mxu0 %v1781_v54 }
 0x2bd   :  { %v1701_v13 = vpack.c.bf16 %v941_v0, %v940_v1  ;;  %v880_v39 = vadd.f32 %v1281_v36, %v879_v10 }
 0x2be   :  { %v943_v55 = vmax.f32 %v885_v7, 0.0 }
 0x2bf   :  { %v942_v60 = vmax.f32 %v880_v39, 0.0  ;;  %v1573_v61 = vpop.f32.mrb[22].mxu1 }
 0x2c0   :  { %v895_v62 = vadd.f32 %v1573_v61, %v1281_v36  ;;  %v889_v3 = vpop.f32.mrb[23].mxu1 }
 0x2c1   :  { %v1705_v4 = vpack.c.bf16 %v943_v55, %v942_v60  ;;  %v890_v8 = vadd.f32 %v1281_v36, %v889_v3 }
 0x2c2   :  { %v945_v9 = vmax.f32 %v895_v62, 0.0 }
 0x2c3   :  { %v944_v15 = vmax.f32 %v890_v8, 0.0  ;;  %v1576_v16 = vpop.f32.mrb[24].mxu1  ;;  %1703 = vmatpush3.bf16.xpose.msk.msra.mxu0 %vm2257_vm5, %v1701_v13 }
 0x2c4   :  { %v905_v17 = vadd.f32 %v1576_v16, %v1281_v36  ;;  %v899_v5 = vpop.f32.mrb[25].mxu1  ;;  %1704 = vmatprep.subr.bf16.mxu0 %v1781_v54 }
 0x2c5   :  { %v1709_v6 = vpack.c.bf16 %v945_v9, %v944_v15  ;;  %v900_v18 = vadd.f32 %v1281_v36, %v899_v5 }
 0x2c6   :  { %v947_v19 = vmax.f32 %v905_v17, 0.0 }
 0x2c7   :  { %v946_v20 = vmax.f32 %v900_v18, 0.0  ;;  %v1579_v21 = vpop.f32.mrb[26].mxu1 }
 0x2c8   :  { %v915_v23 = vadd.f32 %v1579_v21, %v1281_v36  ;;  %v909_v24 = vpop.f32.mrb[27].mxu1 }
 0x2c9   :  { %v1713_v25 = vpack.c.bf16 %v947_v19, %v946_v20  ;;  %v910_v26 = vadd.f32 %v1281_v36, %v909_v24 }
 0x2ca   :  { %v949_v27 = vmax.f32 %v915_v23, 0.0 }
 0x2cb   :  { %v948_v29 = vmax.f32 %v910_v26, 0.0  ;;  %v1582_v30 = vpop.f32.mrb[28].mxu1  ;;  %1707 = vmatpush3.bf16.xpose.msk.msra.mxu0 %vm2257_vm5, %v1705_v4 }
 0x2cc   :  { %v925_v31 = vadd.f32 %v1582_v30, %v1281_v36  ;;  %v919_v32 = vpop.f32.mrb[29].mxu1  ;;  %1708 = vmatprep.subr.bf16.mxu0 %v1781_v54 }
 0x2cd   :  { %v1717_v33 = vpack.c.bf16 %v949_v27, %v948_v29  ;;  %v920_v34 = vadd.f32 %v1281_v36, %v919_v32 }
 0x2ce   :  { %v951_v38 = vmax.f32 %v925_v31, 0.0 }
 0x2cf   :  { %v950_v40 = vmax.f32 %v920_v34, 0.0  ;;  %v1585_v41 = vpop.f32.mrb[30].mxu1 }
 0x2d0   :  { %v935_v42 = vadd.f32 %v1585_v41, %v1281_v36  ;;  %v929_v43 = vpop.f32.mrb[31].mxu1 }
 0x2d1   :  { %v1721_v47 = vpack.c.bf16 %v951_v38, %v950_v40  ;;  %v930_v22 = vadd.f32 %v1281_v36, %v929_v43  ;;  %v1223_v36 = vsub.s32 0, %v1222_v35 }
 0x2d2   :  { %v953_v48 = vmax.f32 %v935_v42, 0.0 }
 0x2d3   :  { %v952_v49 = vmax.f32 %v930_v22, 0.0  ;;  %1711 = vmatpush3.bf16.xpose.msk.msra.mxu0 %vm2257_vm5, %v1709_v6  ;;  %v1224_v44 = vrot.slane %v1219_v37, %v1223_v36 }
 0x2d4   :  { %1712 = vmatprep.subr.bf16.mxu0 %v1781_v54 }
 0x2d5   :  { %v1725_v53 = vpack.c.bf16 %v953_v48, %v952_v49 }
 0x2db   :  { %1715 = vmatpush3.bf16.xpose.msk.msra.mxu0 %vm2257_vm5, %v1713_v25 }
 0x2dc   :  { %1716 = vmatprep.subr.bf16.mxu0 %v1781_v54 }
 0x2e3   :  { %1719 = vmatpush3.bf16.xpose.msk.msra.mxu0 %vm2257_vm5, %v1717_v33 }
 0x2e4   :  { %1720 = vmatprep.subr.bf16.mxu0 %v1781_v54 }
 0x2eb   :  { %1723 = vmatpush3.bf16.xpose.msk.msra.mxu0 %vm2257_vm5, %v1721_v47 }
 0x2ec   :  { %1724 = vmatprep.subr.bf16.mxu0 %v1781_v54 }
 0x2f3   :  { %1727 = vmatpush3.bf16.xpose.msk.msra.mxu0 %vm2257_vm5, %v1725_v53 }
 0x2f5   :  { %v1212_v12 = vpop.f32.mrb[32].mxu1 }
 0x2f6   :  { %v1655_v14 = vpop.f32.mrb[33].mxu1 }
 0x2fa   :  { %1619 = vmatmul.mubr.msk.f32.vlgmr.msra.gmra.mrb[16].mxu0 %vm973_vm4, %v955_v11 }
 0x3cd   :  { %v1091_v45 = vpop.f32.mrb[16].mxu0 }
 0x3ce   :  { %v1213_v46 = vadd.f32 %v1212_v12, %v1091_v45  ;;  %v1620_v50 = vpop.f32.mrb[17].mxu0 }
 0x3d0   :  { %v1225_v54 = vadd.f32 %v1224_v44, %v1213_v46 }
 0x3d2   :  { %1226 = vst [vmem:[%s2303_s12] sm:$0x1] %v1225_v54 }

</bundles_post_ra>
